<compile_context>
chip_gen: v7x
topology: tpu7x:2x2x1
jax: 0.10.0
libtpu: 0.0.40
codegen_flags: <defaults>
</compile_context>

<pallas_src>
import jax
import jax.numpy as jnp
from jax import lax
from jax.experimental import pallas as pl
from jax.experimental.pallas import tpu as pltpu


def _round_up(x, m):
    return (x + m - 1) // m * m


def _shifted(a, sh, axis, pad, mask):
    """result[i] = a[i - sh] along `axis`; out-of-range entries become `pad`.

    `mask` is the hoisted validity mask for this (sh, axis) combination
    (built once per grid step, broadcast across batch / the other axis).
    """
    size = a.shape[axis]
    r = pltpu.roll(a, shift=sh % size, axis=axis)
    return jnp.where(mask, r, jnp.float32(pad))


def _dilate_cross(a, masks):
    # 3x3 cross (cv2 MORPH_ELLIPSE at (3,3)); outside the image contributes 0.
    up = _shifted(a, -1, 1, 0.0, masks[(-1, 1)])
    dn = _shifted(a, 1, 1, 0.0, masks[(1, 1)])
    lf = _shifted(a, -1, 2, 0.0, masks[(-1, 2)])
    rt = _shifted(a, 1, 2, 0.0, masks[(1, 2)])
    return jnp.maximum(jnp.maximum(jnp.maximum(a, up), jnp.maximum(dn, lf)), rt)


def _erode_cross(a, masks):
    # outside the image contributes 1 (does not constrain the min), cv2 default.
    up = _shifted(a, -1, 1, 1.0, masks[(-1, 1)])
    dn = _shifted(a, 1, 1, 1.0, masks[(1, 1)])
    lf = _shifted(a, -1, 2, 1.0, masks[(-1, 2)])
    rt = _shifted(a, 1, 2, 1.0, masks[(1, 2)])
    return jnp.minimum(jnp.minimum(jnp.minimum(a, up), jnp.minimum(dn, lf)), rt)


def _make_kernel(consolidated, h, w, hp, wp):
    padded = (hp != h) or (wp != w)

    def kernel(*refs):
        o_ref = refs[-1]
        if consolidated:
            pr = refs[0]                       # (bt, 3, hp, wp)
            p1 = pr[:, 0, :, :] > 0.5
            p2 = pr[:, 1, :, :] > 0.5
            p3 = pr[:, 2, :, :] > 0.5
        else:
            p1 = refs[0][:, 0, :, :] > 0.5     # (bt, h, w) each
            p2 = refs[1][:, 0, :, :] > 0.5
            p3 = refs[2][:, 0, :, :] > 0.5

        # majority(p1,p2,p3) with p1 tie-break when exactly one fires
        #   == p1 OR (p2 AND p3); single bool -> f32 cast.
        final = (p1 | (p2 & p3)).astype(jnp.float32)

        # Roll boundary masks, hoisted once per grid step at (hp,1) / (1,wp)
        # and broadcast by the selects (no per-element full-tile iota).
        iota_h = lax.broadcasted_iota(jnp.int32, (hp, 1), 0)
        iota_w = lax.broadcasted_iota(jnp.int32, (1, wp), 1)
        masks = {
            (1, 1): iota_h >= 1,          # result[i] = a[i-1] along H
            (-1, 1): iota_h < hp - 1,     # result[i] = a[i+1] along H
            (1, 2): iota_w >= 1,          # along W
            (-1, 2): iota_w < wp - 1,
        }

        if padded:
            valid = (iota_h < h) & (iota_w < w)     # (hp, wp)

            def fix(a, v):
                # reset the padded fringe so it behaves like "outside the image"
                return jnp.where(valid, a, jnp.float32(v))
        else:
            def fix(a, v):
                return a

        # CLOSE (dilate -> erode) then OPEN (erode -> dilate).
        # (the "if any > 0" guard in the reference is a no-op: morphology of
        #  the all-zero mask is the all-zero mask.)
        # The padded fringe is already 0 from jnp.pad -> no fix before the
        # first dilate.
        a = _dilate_cross(final, masks)
        a = _erode_cross(fix(a, 1.0), masks)
        a = _erode_cross(fix(a, 1.0), masks)
        a = _dilate_cross(fix(a, 0.0), masks)

        if padded:
            o_ref[:, 0, :, :] = a[:, :h, :w]
        else:
            o_ref[:, 0, :, :] = a

    return kernel


def _vmem_capacity_bytes():
    try:
        cap = getattr(pltpu.get_tpu_info(), "vmem_capacity_bytes", None)
        if cap:
            return int(cap)
    except Exception:
        pass
    return 64 << 20        # conservative default: v7x per-TensorCore VMEM


def _choose_batch_tile(batch, hp, wp, h, w):
    """Largest divisor of `batch` whose per-step footprint fits the budget."""
    # double-buffered pipeline tiles (3 padded inputs + 1 un-padded output)
    pipeline = 2 * (3 * hp * wp + h * w) * 4
    # ~8 full-tile f32 temporaries live in the body (final, 4 shifts, maxes).
    working = 8 * hp * wp * 4
    per_image = pipeline + working
    budget = int(_vmem_capacity_bytes() * 0.7)
    bt_cap = max(1, budget // per_image)
    # >= 2 grid steps per v7x TensorCore when batch allows (DMA overlap);
    # fall back to >= 2 grid steps for tiny batches.
    if batch >= 4:
        bt_cap = min(bt_cap, batch // 4)
    elif batch >= 2:
        bt_cap = min(bt_cap, batch // 2)
    bt = 1
    for d in range(1, min(bt_cap, batch) + 1):
        if batch % d == 0:
            bt = d
    return bt, per_image


def smart_ensemble_forward(x):
    """x: [B, 4, H, W] float32 -> [B, 1, H, W] float32."""
    B, C, H, W = x.shape
    assert C == 4, "expects 4 channels: original + 3 predictions"
    x = x.astype(jnp.float32)

    aligned = (H % 8 == 0) and (W % 128 == 0)
    Hp, Wp = (H, W) if aligned else (_round_up(H, 8), _round_up(W, 128))

    bt, per_image = _choose_batch_tile(B, Hp, Wp, H, W)
    grid = (B // bt,)

    needed = bt * per_image
    vmem_limit = None
    if needed > (16 << 20):    # smallest default scoped-VMEM budget (v5e)
        vmem_limit = min(int(_vmem_capacity_bytes() * 0.9), needed + (4 << 20))
    # TODO(synk): for images too large to double-buffer whole, add an H-tile
    # grid axis with a 4-row halo (close+open with a radius-1 cross).

    kernel = _make_kernel(consolidated=not aligned, h=H, w=W, hp=Hp, wp=Wp)

    if aligned:
        # Zero wrapper HBM traffic: x is passed three times; channel block 1
        # selects channels 1..3 only (channel 0 never leaves HBM).
        block = (bt, 1, H, W)
        in_specs = [
            pl.BlockSpec(block, lambda b: (b, 1, 0, 0)),
            pl.BlockSpec(block, lambda b: (b, 2, 0, 0)),
            pl.BlockSpec(block, lambda b: (b, 3, 0, 0)),
        ]
        args = (x,) * 3
    else:
        # Fold the channel slice into the pad (channel 0 never copied) and
        # consolidate the 3 channel pipelines into one contiguous DMA per step.
        preds = jnp.pad(x[:, 1:4], ((0, 0), (0, 0), (0, Hp - H), (0, Wp - W)))
        in_specs = [pl.BlockSpec((bt, 3, Hp, Wp), lambda b: (b, 0, 0, 0))]
        args = (preds,)

    # Output stays un-padded: the block's trailing dims equal the full array
    # dims (which waives the (8,128) rule), so no post-kernel slice round-trip.
    out = pl.pallas_call(
        kernel,
        out_shape=jax.ShapeDtypeStruct((B, 1, H, W), jnp.float32),
        grid_spec=pltpu.PrefetchScalarGridSpec(
            num_scalar_prefetch=0,
            grid=grid,
            in_specs=in_specs,
            out_specs=pl.BlockSpec((bt, 1, H, W), lambda b: (b, 0, 0, 0)),
        ),
        compiler_params=pltpu.CompilerParams(
            dimension_semantics=("parallel",),
            vmem_limit_bytes=vmem_limit,
        ),
    )(*args)
    return out


def _reference(x):
    """Pure-JAX reference of threshold + vote + CLOSE/OPEN morphology."""
    x = x.astype(jnp.float32)
    p1 = (x[:, 1] > 0.5).astype(jnp.float32)
    p2 = (x[:, 2] > 0.5).astype(jnp.float32)
    p3 = (x[:, 3] > 0.5).astype(jnp.float32)
    vote = p1 + p2 + p3
    final = jnp.where(vote == 1.0, p1, (vote >= 2.0).astype(jnp.float32))
    H, W = x.shape[2], x.shape[3]

    def shift(a, dh, dw, pad):
        a = jnp.pad(a, ((0, 0), (1, 1), (1, 1)), constant_values=pad)
        return a[:, 1 + dh:1 + dh + H, 1 + dw:1 + dw + W]

    def dil(a):
        return jnp.maximum(
            jnp.maximum(jnp.maximum(a, shift(a, 1, 0, 0.0)),
                        jnp.maximum(shift(a, -1, 0, 0.0), shift(a, 0, 1, 0.0))),
            shift(a, 0, -1, 0.0))

    def ero(a):
        return jnp.minimum(
            jnp.minimum(jnp.minimum(a, shift(a, 1, 0, 1.0)),
                        jnp.minimum(shift(a, -1, 0, 1.0), shift(a, 0, 1, 1.0))),
            shift(a, 0, -1, 1.0))

    return dil(ero(ero(dil(final))))[:, None]


if __name__ == "__main__":
    key = jax.random.PRNGKey(0)

    # Unaligned spatial shape -> exercises the fused slice+pad / consolidated
    # DMA / un-padded output path.
    B, C, H, W = 2, 4, 16, 16
    k0, k1 = jax.random.split(key)
    original = jax.random.normal(k0, (B, 1, H, W), dtype=jnp.float32)
    preds = jax.random.uniform(k1, (B, 3, H, W), dtype=jnp.float32)
    x = jnp.concatenate([original, preds], axis=1)          # [B, 4, H, W]

    out = smart_ensemble_forward(x)
    jax.block_until_ready(out)
    assert out.shape == (B, 1, H, W), out.shape
    assert out.dtype == jnp.float32
    assert bool(jnp.all(out == _reference(x))), "mismatch vs JAX reference"

    # Aligned spatial shape -> exercises the zero-copy (x, x, x) channel path.
    k2, k3 = jax.random.split(k1)
    x2 = jnp.concatenate(
        [jax.random.normal(k2, (2, 1, 8, 128), dtype=jnp.float32),
         jax.random.uniform(k3, (2, 3, 8, 128), dtype=jnp.float32)], axis=1)
    out2 = smart_ensemble_forward(x2)
    jax.block_until_ready(out2)
    assert out2.shape == (2, 1, 8, 128)
    assert bool(jnp.all(out2 == _reference(x2))), "mismatch vs JAX reference"

    print("KERNEL_OK")
</pallas_src>

<mosaic_0001>
module attributes {stable_mosaic.version = 11 : i64} {
  func.func @kernel(%arg0: i32, %arg1: memref<1x3x16x128xf32, #tpu.memory_space<vmem>>, %arg2: memref<1x1x16x16xf32, #tpu.memory_space<vmem>>) attributes {dimension_semantics = [#tpu.dimension_semantics<parallel>], iteration_bounds = array<i64: 2>, scalar_prefetch = 0 : i64, scratch_operands = 0 : i64, tpu.core_type = #tpu.core_type<tc>, window_params = [{transform_indices = @transform_0, window_bounds = array<i64: 1, 3, 16, 128>}, {transform_indices = @transform_1, window_bounds = array<i64: 1, 1, 16, 16>}]} {
    %c0 = arith.constant 0 : index
    %c0_0 = arith.constant 0 : index
    %c0_1 = arith.constant 0 : index
    %c0_2 = arith.constant 0 : index
    %0 = vector.load %arg1[%c0, %c0_0, %c0_1, %c0_2] : memref<1x3x16x128xf32, #tpu.memory_space<vmem>>, vector<1x1x16x128xf32>
    %1 = vector.shape_cast %0 : vector<1x1x16x128xf32> to vector<1x16x128xf32>
    %cst = arith.constant 5.000000e-01 : f32
    %2 = vector.broadcast %cst : f32 to vector<1x16x128xf32>
    %3 = arith.cmpf ogt, %1, %2 : vector<1x16x128xf32>
    %c0_3 = arith.constant 0 : index
    %c1 = arith.constant 1 : index
    %c0_4 = arith.constant 0 : index
    %c0_5 = arith.constant 0 : index
    %4 = vector.load %arg1[%c0_3, %c1, %c0_4, %c0_5] : memref<1x3x16x128xf32, #tpu.memory_space<vmem>>, vector<1x1x16x128xf32>
    %5 = vector.shape_cast %4 : vector<1x1x16x128xf32> to vector<1x16x128xf32>
    %cst_6 = arith.constant 5.000000e-01 : f32
    %6 = vector.broadcast %cst_6 : f32 to vector<1x16x128xf32>
    %7 = arith.cmpf ogt, %5, %6 : vector<1x16x128xf32>
    %c0_7 = arith.constant 0 : index
    %c2 = arith.constant 2 : index
    %c0_8 = arith.constant 0 : index
    %c0_9 = arith.constant 0 : index
    %8 = vector.load %arg1[%c0_7, %c2, %c0_8, %c0_9] : memref<1x3x16x128xf32, #tpu.memory_space<vmem>>, vector<1x1x16x128xf32>
    %9 = vector.shape_cast %8 : vector<1x1x16x128xf32> to vector<1x16x128xf32>
    %cst_10 = arith.constant 5.000000e-01 : f32
    %10 = vector.broadcast %cst_10 : f32 to vector<1x16x128xf32>
    %11 = arith.cmpf ogt, %9, %10 : vector<1x16x128xf32>
    %12 = arith.andi %7, %11 : vector<1x16x128xi1>
    %13 = arith.ori %3, %12 : vector<1x16x128xi1>
    %14 = arith.extui %13 : vector<1x16x128xi1> to vector<1x16x128xi32>
    %15 = arith.sitofp %14 : vector<1x16x128xi32> to vector<1x16x128xf32>
    %16 = tpu.iota {dimensions = array<i32: 0>} : vector<16x1xi32>
    %17 = tpu.iota {dimensions = array<i32: 1>} : vector<1x128xi32>
    %c1_i32 = arith.constant 1 : i32
    %18 = vector.broadcast %c1_i32 : i32 to vector<16x1xi32>
    %19 = arith.cmpi sge, %16, %18 : vector<16x1xi32>
    %c15_i32 = arith.constant 15 : i32
    %20 = vector.broadcast %c15_i32 : i32 to vector<16x1xi32>
    %21 = arith.cmpi slt, %16, %20 : vector<16x1xi32>
    %c1_i32_11 = arith.constant 1 : i32
    %22 = vector.broadcast %c1_i32_11 : i32 to vector<1x128xi32>
    %23 = arith.cmpi sge, %17, %22 : vector<1x128xi32>
    %c127_i32 = arith.constant 127 : i32
    %24 = vector.broadcast %c127_i32 : i32 to vector<1x128xi32>
    %25 = arith.cmpi slt, %17, %24 : vector<1x128xi32>
    %c16_i32 = arith.constant 16 : i32
    %26 = vector.broadcast %c16_i32 : i32 to vector<16x1xi32>
    %27 = arith.cmpi slt, %16, %26 : vector<16x1xi32>
    %c16_i32_12 = arith.constant 16 : i32
    %28 = vector.broadcast %c16_i32_12 : i32 to vector<1x128xi32>
    %29 = arith.cmpi slt, %17, %28 : vector<1x128xi32>
    %30 = vector.broadcast %27 : vector<16x1xi1> to vector<16x128xi1>
    %31 = vector.broadcast %29 : vector<1x128xi1> to vector<16x128xi1>
    %32 = arith.andi %30, %31 : vector<16x128xi1>
    %c15_i32_13 = arith.constant 15 : i32
    %33 = tpu.dynamic_rotate %15 by %c15_i32_13 dim 1 : vector<1x16x128xf32>, i32 -> vector<1x16x128xf32>
    %cst_14 = arith.constant 0.000000e+00 : f32
    %34 = vector.shape_cast %21 : vector<16x1xi1> to vector<1x16x1xi1>
    %35 = vector.broadcast %34 : vector<1x16x1xi1> to vector<1x16x128xi1>
    %36 = vector.broadcast %cst_14 : f32 to vector<1x16x128xf32>
    %37 = arith.select %35, %33, %36 : vector<1x16x128xi1>, vector<1x16x128xf32>
    %c1_i32_15 = arith.constant 1 : i32
    %38 = tpu.dynamic_rotate %15 by %c1_i32_15 dim 1 : vector<1x16x128xf32>, i32 -> vector<1x16x128xf32>
    %cst_16 = arith.constant 0.000000e+00 : f32
    %39 = vector.shape_cast %19 : vector<16x1xi1> to vector<1x16x1xi1>
    %40 = vector.broadcast %39 : vector<1x16x1xi1> to vector<1x16x128xi1>
    %41 = vector.broadcast %cst_16 : f32 to vector<1x16x128xf32>
    %42 = arith.select %40, %38, %41 : vector<1x16x128xi1>, vector<1x16x128xf32>
    %c127_i32_17 = arith.constant 127 : i32
    %43 = tpu.dynamic_rotate %15 by %c127_i32_17 dim 2 : vector<1x16x128xf32>, i32 -> vector<1x16x128xf32>
    %cst_18 = arith.constant 0.000000e+00 : f32
    %44 = vector.shape_cast %25 : vector<1x128xi1> to vector<1x1x128xi1>
    %45 = vector.broadcast %44 : vector<1x1x128xi1> to vector<1x16x128xi1>
    %46 = vector.broadcast %cst_18 : f32 to vector<1x16x128xf32>
    %47 = arith.select %45, %43, %46 : vector<1x16x128xi1>, vector<1x16x128xf32>
    %c1_i32_19 = arith.constant 1 : i32
    %48 = tpu.dynamic_rotate %15 by %c1_i32_19 dim 2 : vector<1x16x128xf32>, i32 -> vector<1x16x128xf32>
    %cst_20 = arith.constant 0.000000e+00 : f32
    %49 = vector.shape_cast %23 : vector<1x128xi1> to vector<1x1x128xi1>
    %50 = vector.broadcast %49 : vector<1x1x128xi1> to vector<1x16x128xi1>
    %51 = vector.broadcast %cst_20 : f32 to vector<1x16x128xf32>
    %52 = arith.select %50, %48, %51 : vector<1x16x128xi1>, vector<1x16x128xf32>
    %53 = arith.maximumf %15, %37 : vector<1x16x128xf32>
    %54 = arith.maximumf %42, %47 : vector<1x16x128xf32>
    %55 = arith.maximumf %53, %54 : vector<1x16x128xf32>
    %56 = arith.maximumf %55, %52 : vector<1x16x128xf32>
    %cst_21 = arith.constant 1.000000e+00 : f32
    %57 = vector.shape_cast %32 : vector<16x128xi1> to vector<1x16x128xi1>
    %58 = vector.broadcast %cst_21 : f32 to vector<1x16x128xf32>
    %59 = arith.select %57, %56, %58 : vector<1x16x128xi1>, vector<1x16x128xf32>
    %c15_i32_22 = arith.constant 15 : i32
    %60 = tpu.dynamic_rotate %59 by %c15_i32_22 dim 1 : vector<1x16x128xf32>, i32 -> vector<1x16x128xf32>
    %cst_23 = arith.constant 1.000000e+00 : f32
    %61 = vector.shape_cast %21 : vector<16x1xi1> to vector<1x16x1xi1>
    %62 = vector.broadcast %61 : vector<1x16x1xi1> to vector<1x16x128xi1>
    %63 = vector.broadcast %cst_23 : f32 to vector<1x16x128xf32>
    %64 = arith.select %62, %60, %63 : vector<1x16x128xi1>, vector<1x16x128xf32>
    %c1_i32_24 = arith.constant 1 : i32
    %65 = tpu.dynamic_rotate %59 by %c1_i32_24 dim 1 : vector<1x16x128xf32>, i32 -> vector<1x16x128xf32>
    %cst_25 = arith.constant 1.000000e+00 : f32
    %66 = vector.shape_cast %19 : vector<16x1xi1> to vector<1x16x1xi1>
    %67 = vector.broadcast %66 : vector<1x16x1xi1> to vector<1x16x128xi1>
    %68 = vector.broadcast %cst_25 : f32 to vector<1x16x128xf32>
    %69 = arith.select %67, %65, %68 : vector<1x16x128xi1>, vector<1x16x128xf32>
    %c127_i32_26 = arith.constant 127 : i32
    %70 = tpu.dynamic_rotate %59 by %c127_i32_26 dim 2 : vector<1x16x128xf32>, i32 -> vector<1x16x128xf32>
    %cst_27 = arith.constant 1.000000e+00 : f32
    %71 = vector.shape_cast %25 : vector<1x128xi1> to vector<1x1x128xi1>
    %72 = vector.broadcast %71 : vector<1x1x128xi1> to vector<1x16x128xi1>
    %73 = vector.broadcast %cst_27 : f32 to vector<1x16x128xf32>
    %74 = arith.select %72, %70, %73 : vector<1x16x128xi1>, vector<1x16x128xf32>
    %c1_i32_28 = arith.constant 1 : i32
    %75 = tpu.dynamic_rotate %59 by %c1_i32_28 dim 2 : vector<1x16x128xf32>, i32 -> vector<1x16x128xf32>
    %cst_29 = arith.constant 1.000000e+00 : f32
    %76 = vector.shape_cast %23 : vector<1x128xi1> to vector<1x1x128xi1>
    %77 = vector.broadcast %76 : vector<1x1x128xi1> to vector<1x16x128xi1>
    %78 = vector.broadcast %cst_29 : f32 to vector<1x16x128xf32>
    %79 = arith.select %77, %75, %78 : vector<1x16x128xi1>, vector<1x16x128xf32>
    %80 = arith.minimumf %59, %64 : vector<1x16x128xf32>
    %81 = arith.minimumf %69, %74 : vector<1x16x128xf32>
    %82 = arith.minimumf %80, %81 : vector<1x16x128xf32>
    %83 = arith.minimumf %82, %79 : vector<1x16x128xf32>
    %cst_30 = arith.constant 1.000000e+00 : f32
    %84 = vector.shape_cast %32 : vector<16x128xi1> to vector<1x16x128xi1>
    %85 = vector.broadcast %cst_30 : f32 to vector<1x16x128xf32>
    %86 = arith.select %84, %83, %85 : vector<1x16x128xi1>, vector<1x16x128xf32>
    %c15_i32_31 = arith.constant 15 : i32
    %87 = tpu.dynamic_rotate %86 by %c15_i32_31 dim 1 : vector<1x16x128xf32>, i32 -> vector<1x16x128xf32>
    %cst_32 = arith.constant 1.000000e+00 : f32
    %88 = vector.shape_cast %21 : vector<16x1xi1> to vector<1x16x1xi1>
    %89 = vector.broadcast %88 : vector<1x16x1xi1> to vector<1x16x128xi1>
    %90 = vector.broadcast %cst_32 : f32 to vector<1x16x128xf32>
    %91 = arith.select %89, %87, %90 : vector<1x16x128xi1>, vector<1x16x128xf32>
    %c1_i32_33 = arith.constant 1 : i32
    %92 = tpu.dynamic_rotate %86 by %c1_i32_33 dim 1 : vector<1x16x128xf32>, i32 -> vector<1x16x128xf32>
    %cst_34 = arith.constant 1.000000e+00 : f32
    %93 = vector.shape_cast %19 : vector<16x1xi1> to vector<1x16x1xi1>
    %94 = vector.broadcast %93 : vector<1x16x1xi1> to vector<1x16x128xi1>
    %95 = vector.broadcast %cst_34 : f32 to vector<1x16x128xf32>
    %96 = arith.select %94, %92, %95 : vector<1x16x128xi1>, vector<1x16x128xf32>
    %c127_i32_35 = arith.constant 127 : i32
    %97 = tpu.dynamic_rotate %86 by %c127_i32_35 dim 2 : vector<1x16x128xf32>, i32 -> vector<1x16x128xf32>
    %cst_36 = arith.constant 1.000000e+00 : f32
    %98 = vector.shape_cast %25 : vector<1x128xi1> to vector<1x1x128xi1>
    %99 = vector.broadcast %98 : vector<1x1x128xi1> to vector<1x16x128xi1>
    %100 = vector.broadcast %cst_36 : f32 to vector<1x16x128xf32>
    %101 = arith.select %99, %97, %100 : vector<1x16x128xi1>, vector<1x16x128xf32>
    %c1_i32_37 = arith.constant 1 : i32
    %102 = tpu.dynamic_rotate %86 by %c1_i32_37 dim 2 : vector<1x16x128xf32>, i32 -> vector<1x16x128xf32>
    %cst_38 = arith.constant 1.000000e+00 : f32
    %103 = vector.shape_cast %23 : vector<1x128xi1> to vector<1x1x128xi1>
    %104 = vector.broadcast %103 : vector<1x1x128xi1> to vector<1x16x128xi1>
    %105 = vector.broadcast %cst_38 : f32 to vector<1x16x128xf32>
    %106 = arith.select %104, %102, %105 : vector<1x16x128xi1>, vector<1x16x128xf32>
    %107 = arith.minimumf %86, %91 : vector<1x16x128xf32>
    %108 = arith.minimumf %96, %101 : vector<1x16x128xf32>
    %109 = arith.minimumf %107, %108 : vector<1x16x128xf32>
    %110 = arith.minimumf %109, %106 : vector<1x16x128xf32>
    %cst_39 = arith.constant 0.000000e+00 : f32
    %111 = vector.shape_cast %32 : vector<16x128xi1> to vector<1x16x128xi1>
    %112 = vector.broadcast %cst_39 : f32 to vector<1x16x128xf32>
    %113 = arith.select %111, %110, %112 : vector<1x16x128xi1>, vector<1x16x128xf32>
    %c15_i32_40 = arith.constant 15 : i32
    %114 = tpu.dynamic_rotate %113 by %c15_i32_40 dim 1 : vector<1x16x128xf32>, i32 -> vector<1x16x128xf32>
    %cst_41 = arith.constant 0.000000e+00 : f32
    %115 = vector.shape_cast %21 : vector<16x1xi1> to vector<1x16x1xi1>
    %116 = vector.broadcast %115 : vector<1x16x1xi1> to vector<1x16x128xi1>
    %117 = vector.broadcast %cst_41 : f32 to vector<1x16x128xf32>
    %118 = arith.select %116, %114, %117 : vector<1x16x128xi1>, vector<1x16x128xf32>
    %c1_i32_42 = arith.constant 1 : i32
    %119 = tpu.dynamic_rotate %113 by %c1_i32_42 dim 1 : vector<1x16x128xf32>, i32 -> vector<1x16x128xf32>
    %cst_43 = arith.constant 0.000000e+00 : f32
    %120 = vector.shape_cast %19 : vector<16x1xi1> to vector<1x16x1xi1>
    %121 = vector.broadcast %120 : vector<1x16x1xi1> to vector<1x16x128xi1>
    %122 = vector.broadcast %cst_43 : f32 to vector<1x16x128xf32>
    %123 = arith.select %121, %119, %122 : vector<1x16x128xi1>, vector<1x16x128xf32>
    %c127_i32_44 = arith.constant 127 : i32
    %124 = tpu.dynamic_rotate %113 by %c127_i32_44 dim 2 : vector<1x16x128xf32>, i32 -> vector<1x16x128xf32>
    %cst_45 = arith.constant 0.000000e+00 : f32
    %125 = vector.shape_cast %25 : vector<1x128xi1> to vector<1x1x128xi1>
    %126 = vector.broadcast %125 : vector<1x1x128xi1> to vector<1x16x128xi1>
    %127 = vector.broadcast %cst_45 : f32 to vector<1x16x128xf32>
    %128 = arith.select %126, %124, %127 : vector<1x16x128xi1>, vector<1x16x128xf32>
    %c1_i32_46 = arith.constant 1 : i32
    %129 = tpu.dynamic_rotate %113 by %c1_i32_46 dim 2 : vector<1x16x128xf32>, i32 -> vector<1x16x128xf32>
    %cst_47 = arith.constant 0.000000e+00 : f32
    %130 = vector.shape_cast %23 : vector<1x128xi1> to vector<1x1x128xi1>
    %131 = vector.broadcast %130 : vector<1x1x128xi1> to vector<1x16x128xi1>
    %132 = vector.broadcast %cst_47 : f32 to vector<1x16x128xf32>
    %133 = arith.select %131, %129, %132 : vector<1x16x128xi1>, vector<1x16x128xf32>
    %134 = arith.maximumf %113, %118 : vector<1x16x128xf32>
    %135 = arith.maximumf %123, %128 : vector<1x16x128xf32>
    %136 = arith.maximumf %134, %135 : vector<1x16x128xf32>
    %137 = arith.maximumf %136, %133 : vector<1x16x128xf32>
    %138 = vector.extract_strided_slice %137 {offsets = [0, 0, 0], sizes = [1, 16, 16], strides = [1, 1, 1]} : vector<1x16x128xf32> to vector<1x16x16xf32>
    %c0_48 = arith.constant 0 : index
    %c0_49 = arith.constant 0 : index
    %c0_50 = arith.constant 0 : index
    %c0_51 = arith.constant 0 : index
    %139 = vector.load %arg2[%c0_48, %c0_49, %c0_50, %c0_51] : memref<1x1x16x16xf32, #tpu.memory_space<vmem>>, vector<1x1x16x16xf32>
    %140 = vector.shape_cast %139 : vector<1x1x16x16xf32> to vector<1x16x16xf32>
    %141 = vector.shape_cast %138 : vector<1x16x16xf32> to vector<1x1x16x16xf32>
    tpu.vector_store %arg2[%c0_48, %c0_49, %c0_50, %c0_51], %141 {strides = array<i32>} : memref<1x1x16x16xf32, #tpu.memory_space<vmem>>, vector<1x1x16x16xf32>,
    return
  }
  func.func @transform_0(%arg0: i32) -> (i32, i32, i32, i32) {
    %c0_i32 = arith.constant 0 : i32
    %c0_i32_0 = arith.constant 0 : i32
    %c0_i32_1 = arith.constant 0 : i32
    %c0_i32_2 = arith.constant 0 : i32
    return %arg0, %c0_i32, %c0_i32_0, %c0_i32_1 : i32, i32, i32, i32
  }
  func.func @transform_1(%arg0: i32) -> (i32, i32, i32, i32) {
    %c0_i32 = arith.constant 0 : i32
    %c0_i32_0 = arith.constant 0 : i32
    %c0_i32_1 = arith.constant 0 : i32
    %c0_i32_2 = arith.constant 0 : i32
    return %arg0, %c0_i32, %c0_i32_0, %c0_i32_1 : i32, i32, i32, i32
  }
}

</mosaic_0001>

<bundles_post_ra>
// kernel: tpu_custom_call.1
= control target key start
LH: loop header
LB: loop body
LE: loop exit
PB: predicated region body
PF: predicated region fallthrough
CT: control target
= control target key end

     0   :  { %6 = vsyncpa [#allocation3], 0  ;;  %s919_s0 = inlined_call_operand.hbm [shape: f32[2,3,16,128], index: 0, kind: input, shape index: {}]   ;;  %s920_s1 = inlined_call_operand.hbm [shape: f32[2,1,16,16], index: 1, kind: output, shape index: {}]  }
   0x1   :  { %8 = vsyncpa [#allocation3 + $0x1], 0 }
   0x2   :  { %9 = vsyncpa [#allocation4], 0 }
   0x3   :  { %11 = vsyncpa [#allocation4 + $0x1], 0  ;;  %s648_s6 = smov 0   ;;  %s650_s7 = smov 0  }
   0x4   :  { %s652_s8 = smov 0   ;;  %s654_s9 = smov 0  }
   0x5 LB: > { %s669_s10 = sadd.s32 4294967295, %s627_s9   ;;  %s417_s11 = sadd.s32 4294967294, %s627_s9   ;;  %s627_s9 = sphi %s654_s9, %s932_s9   ;;  %s623_s8 = sphi %s652_s8, %s931_s8   ;;  %s619_s7 = sphi %s650_s7, %s930_s7   ;;  %s615_s6 = sphi %s648_s6, %s929_s6  }
   0x6   : > { %s673_s12 = sadd.s32 1, %s627_s9   ;;  %s24_s13 = sadd.s32 1, %s623_s8 }
   0x7   : > { %s21_s14 = ssub.s32 %s627_s9, %s673_s12  ;;  %p31_p0 = scmp.ne.s32.totalorder %s623_s8, %s619_s7 }
   0x8   : > { %p22_p1 = scmp.eq.s32.totalorder %s21_s14, 0  ;;  %p32_p2 = scmp.eq.s32.totalorder %s627_s9, 0 }
   0x9   : > { %p37_p3 = scmp.ne.s32.totalorder %s619_s7, %s615_s6  ;;  %p38_p4 = scmp.eq.s32.totalorder %s669_s10, 0 }
   0xa   : > { %s685_s15 = scalar_select %p22_p1, %s623_s8, %s24_s13  }
   0xb   : > { %p33_p5 = por %p32_p2, %p31_p0  ;;  %p687_p6 = por %p38_p4, %p37_p3 }
   0xc   : > { %p61_p7 = scmp.eq.s32.totalorder %s669_s10, 1  ;;  %p67_p8 = scmp.eq.s32.totalorder %s417_s11, 1 }
   0xd   : > { %p450_p10 = scmp.lt.s32.totalorder %s627_s9, 2  ;;  %s87_s19 = sand.u32 1, %s623_s8  }
   0xe   : > { %p694_p11 = por %p61_p7, %p31_p0  ;;  %p698_p12 = por %p67_p8, %p37_p3 }
   0xf   : > { %s436_s20 = smul.u32 768, %s627_s9  ;;  %p709_p13 = pnand %p450_p10, %p33_p5 }
  0x10   : > { %s923_s17 = scalar_select %p694_p11, 1, 0 }
  0x11   : > { %s924_s18 = scalar_select %p698_p12, 1, 0 }
  0x12   : > { %s435_s21 = smul.u32 48, %s87_s19  ;;  %s707_s24 = scalar_lea.hbm %s919_s0, %s436_s20 }
  0x13   : > { %s715_s28 = scalar_lea.sflag [#allocation3], %s87_s19  ;;  %s531_s29 = scalar_lea.hbm %s707_s24, 768 }
  0x14   : > { %s91_s26 = scalar_lea.vmem [#allocation2], %s435_s21  ;;  %p532_p0 = scmp.ne.s32.totalorder %s707_s24, %s531_s29 }
  0x15   : > { %s98_s27 = sshll.u32 %s91_s26, 4  ;;  %p533_p1 = pneg %p709_p13  ;;  %s713_s27 = int_to_ptr.vmem [resolvable:$true] %s98_s27 }
  0x16   : > { %s536_s3 = scalar_lea.hbm %s919_s0, 1536  ;;  %p537_p4 = scmp.lt.u32.totalorder %s707_s24, %s919_s0 }
  0x17   : > { %p534_p2 = pnand %p533_p1, %p532_p0  ;;  %p538_p5 = scmp.lt.u32.totalorder %s536_s3, %s531_s29 }
  0x18   : > { %p540_p8 = scmp.lt.u32.totalorder %s531_s29, %s707_s24 }
  0x19   : > { %p535_p3 = pneg %p534_p2  ;;  %p539_p7 = por %p538_p5, %p537_p4 }
  0x1b   : > { %p541_p10 = por %p540_p8, %p539_p7 }
  0x1d   : > { %p542_p9 = pnand %p541_p10, %p535_p3 }
  0x1f   : > { %545 = shalt.err (!%p542_p9)
}
  0x20   : > { %s546_s11 = scalar_lea.vmem %s713_s27, 768  ;;  %s629_s13 = smov [#allocation2]  }
  0x21   : > { %p547_p0 = scmp.ne.s32.totalorder %s713_s27, %s546_s11  ;;  %s551_s14 = sshll.u32 %s629_s13, 4  ;;  %s552_s14 = int_to_ptr.vmem [resolvable:$false] %s551_s14 }
  0x22   : > { %s553_s19 = scalar_lea.vmem %s552_s14, 1536  ;;  %p554_p11 = scmp.lt.s32.totalorder %s713_s27, %s552_s14 }
  0x23   : > { %p549_p2 = pnand %p547_p0, %p533_p1  ;;  %p555_p4 = scmp.lt.s32.totalorder %s553_s19, %s546_s11 }
  0x25   : > { %p550_p12 = pneg %p549_p2  ;;  %p556_p5 = por %p555_p4, %p554_p11 }
  0x27   : > { %p557_p7 = pnand %p556_p5, %p550_p12 }
  0x29   : > { %560 = shalt.err (!%p557_p7)
}
  0x2a   : > { %s630_s20 = smov 128   ;;  %s631_s21 = smov 8  }
  0x2b   : > { %445 = dma.hbm_to_vmem [thread:$0]  (!%p709_p13), %s707_s24, 768, %s713_s27, %s715_s28, %s630_s20, %s630_s20, %s631_s21  }
  0x2c   : > { %p421_p9 = scmp.ge.s32.totalorder %s627_s9, 1  ;;  %p106_p1 = scmp.lt.s32.totalorder %s627_s9, 3 }
  0x2e   : > { %p107_p3 = pnand %p421_p9, %p106_p1 }
  0x2f   : > { %s746_s22 = sand.u32 (!%p107_p3), 1, %s619_s7  }
  0x30   : > { %110 = sbr.rel (%p107_p3) target bundleno = 586 (0x24a), region = 24  ;;  %s113_s26 = scalar_lea.sflag (!%p107_p3), [#allocation3], %s746_s22 }
  0x31   : > { %s437_s23 = smul.u32 (!%p107_p3), 48, %s746_s22 }
  0x33   : > { %s116_s29 = scalar_lea.vmem (!%p107_p3), [#allocation2], %s437_s23 }
  0x37   : > { %606 = dma.done.wait (%p687_p6), %s113_s26, 768  }
  0x38   : > { %608 = vsyncadd (%p687_p6), %s113_s26, 4294966528  ;;  %v157_v0 = vlaneseq  ;;  %v135_v1 = vld [vmem:[%s116_s29] sm:$0xff]  ;;  %v136_v2 = vld [vmem:[%s116_s29 + $0x8] sm:$0xff]  ;;  %v632_v9 = vmov 0.0   ;;  %s633_s16 = smov 127   ;;  %s634_s24 = smov 1  }
  0x39   : > { %v423_v3 = vld [vmem:[%s116_s29 + $0x10] sm:$0xff]  ;;  %v424_v5 = vld [vmem:[%s116_s29 + $0x18] sm:$0xff]  ;;  %v425_v6 = vld [vmem:[%s116_s29 + $0x20] sm:$0xff]  ;;  %vm137_vm1 = vcmp.gt.f32.partialorder %v135_v1, 0.5  ;;  %vm138_vm5 = vcmp.gt.f32.partialorder %v136_v2, 0.5  ;;  %s422_s25 = sshll.u32 %s746_s22, 4 }
  0x3a   : > { %v754_v4 = vshrl.u32 %v157_v0, 7  ;;  %vm142_vm0 = vcmp.gt.f32.partialorder %v423_v3, 0.5  ;;  %v426_v7 = vld [vmem:[%s116_s29 + $0x28] sm:$0xff]  ;;  %vm143_vm2 = vcmp.gt.f32.partialorder %v424_v5, 0.5  ;;  %vm147_vm3 = vcmp.gt.f32.partialorder %v425_v6, 0.5  ;;  %s434_s27 = sshll.u32 %s669_s10, 8 }
  0x3b   : > { %vm148_vm4 = vcmp.gt.f32.partialorder %v426_v7, 0.5  ;;  %vm149_vm6 = vmand %vm142_vm0, %vm147_vm3  ;;  %v774_v24 = vand.u32 127, %v157_v0  ;;  %s134_s28 = scalar_lea.vmem [#allocation5], %s422_s25  ;;  %s873_s4 = scalar_lea.hbm %s920_s1, %s434_s27 }
  0x3c   : > { %vm150_vm7 = vmand %vm143_vm2, %vm148_vm4  ;;  %v757_v8 = vadd.s32 8, %v754_v4  ;;  %vm192_vm10 = vcmp.lt.s32.totalorder %v754_v4, 1  ;;  %vm181_vm11 = vcmp.lt.s32.totalorder %v754_v4, 7  ;;  %vm162_vm13 = vcmp.ge.s32.totalorder %v754_v4, 1  ;;  %s344_s30 = sshll.u32 %s134_s28, 4  ;;  %s331_s10 = scalar_lea.sflag [#allocation4], %s746_s22  ;;  %s875_s30 = int_to_ptr.vmem [resolvable:$true] %s344_s30 }
  0x3d   : > { %vm151_vm8 = vmor %vm137_vm1, %vm149_vm6  ;;  %vm167_vm14 = vcmp.lt.s32.totalorder %v774_v24, 127  ;;  %vm166_vm15 = vcmp.ge.s32.totalorder %v774_v24, 1  ;;  %vm170_vm0 = vcmp.lt.s32.totalorder %v774_v24, 16  ;;  %vm327_vm1 = vcmask 130048   ;;  %s561_s5 = scalar_lea.vmem %s875_s30, 256  ;;  %p926_p11 = scmp.ne.s32.totalorder %s923_s17, 0 }
  0x3e   : > { %vm152_vm9 = vmor %vm138_vm5, %vm150_vm7  ;;  %v427_v10 = vsel %vm151_vm8, 1.0, %v632_v9  ;;  %vm165_vm12 = vcmp.lt.s32.totalorder %v757_v8, 15  ;;  %p562_p6 = scmp.ne.s32.totalorder %s875_s30, %s561_s5  ;;  %s635_s11 = smov [#allocation5]  }
  0x3f   : > { %v428_v11 = vsel %vm152_vm9, 1.0, %v632_v9  ;;  %v179_v12 = vrot.slane %v427_v10, 1  ;;  %v190_v13 = vrot.slane %v427_v10, 7  ;;  %s565_s13 = sshll.u32 %s635_s11, 4  ;;  %s566_s13 = int_to_ptr.vmem [resolvable:$false] %s565_s13 }
  0x40   : > { %v180_v14 = vrot.slane %v428_v11, 1  ;;  %v491_v15 = vpack.i.bf16 %v428_v11, %v427_v10  ;;  %v191_v16 = vrot.slane %v428_v11, 7  ;;  %p563_p12 = pnand %p562_p6, %p926_p11  ;;  %s567_s14 = scalar_lea.vmem %s566_s13, 512 }
  0x41   : > { %p568_p8 = scmp.lt.s32.totalorder %s875_s30, %s566_s13  ;;  %p569_p10 = scmp.lt.s32.totalorder %s567_s14, %s561_s5 }
  0x42   : > { %492 = vrot.lane.b32.xlu0 %v491_v15, %s633_s16  ;;  %v193_v17 = vsel %vm192_vm10, %v190_v13, %v191_v16  ;;  %v194_v18 = vsel %vm192_vm10, %v191_v16, %v190_v13  ;;  %v182_v19 = vsel %vm181_vm11, %v179_v12, %v180_v14  ;;  %v183_v20 = vsel %vm181_vm11, %v180_v14, %v179_v12  ;;  %p564_p13 = pneg %p563_p12 }
  0x43   : > { %v189_v21 = vsel %vm165_vm12, %v183_v20, 0.0  ;;  %v217_v22 = vmax.f32 %v427_v10, %v182_v19  ;;  %v199_v28 = vsel %vm162_vm13, %v194_v18, 0.0  ;;  %p570_p0 = por %p569_p10, %p568_p8 }
  0x44   : > { %v218_v23 = vmax.f32 %v428_v11, %v189_v21 }
  0x45   : > { %p571_p2 = pnand %p570_p0, %p564_p13 }
  0x46   : > { %497 = vrot.lane.b32.xlu0 %v491_v15, %s634_s24 }
  0xb4   : > { %v493_v25 = vpop.permute.xlu0 %492 }
  0xb5   : > { %v495_v26 = vunpack.i.h.bf16 %v493_v25  ;;  %v494_v27 = vunpack.i.l.bf16 %v493_v25 }
  0xb7   : > { %v208_v29 = vsel %vm167_vm14, %v495_v26, 0.0  ;;  %v207_v30 = vsel %vm167_vm14, %v494_v27, 0.0 }
  0xb8   : > { %v219_v31 = vmax.f32 %v199_v28, %v207_v30  ;;  %v220_v32 = vmax.f32 %v193_v17, %v208_v29  ;;  %v498_v33 = vpop.permute.xlu0 %497 }
  0xb9   : > { %v500_v34 = vunpack.i.h.bf16 %v498_v33  ;;  %v499_v35 = vunpack.i.l.bf16 %v498_v33 }
  0xba   : > { %v221_v36 = vmax.f32 %v217_v22, %v219_v31  ;;  %v222_v37 = vmax.f32 %v218_v23, %v220_v32 }
  0xbb   : > { %v216_v38 = vsel %vm166_vm15, %v500_v34, 0.0  ;;  %v215_v39 = vsel %vm166_vm15, %v499_v35, 0.0 }
  0xbc   : > { %v223_v40 = vmax.f32 %v221_v36, %v215_v39  ;;  %v224_v41 = vmax.f32 %v222_v37, %v216_v38 }
  0xbe   : > { %v225_v42 = vsel %vm170_vm0, %v223_v40, 1.0  ;;  %v226_v43 = vsel %vm170_vm0, %v224_v41, 1.0 }
  0xbf   : > { %v227_v44 = vrot.slane %v225_v42, 1  ;;  %v228_v45 = vrot.slane %v226_v43, 1  ;;  %v501_v46 = vpack.i.bf16 %v226_v43, %v225_v42  ;;  %v234_v47 = vrot.slane %v226_v43, 7 }
  0xc0   : > { %v233_v48 = vrot.slane %v225_v42, 7 }
  0xc1   : > { %502 = vrot.lane.b32.xlu1 %v501_v46, %s633_s16  ;;  %v229_v49 = vsel %vm181_vm11, %v227_v44, %v228_v45  ;;  %v230_v50 = vsel %vm181_vm11, %v228_v45, %v227_v44 }
  0xc2   : > { %v235_v51 = vsel %vm192_vm10, %v233_v48, %v234_v47  ;;  %v236_v52 = vsel %vm192_vm10, %v234_v47, %v233_v48  ;;  %v232_v53 = vsel %vm165_vm12, %v230_v50, 1.0  ;;  %v251_v54 = vmin.f32 %v225_v42, %v229_v49 }
  0xc3   : > { %v252_v55 = vmin.f32 %v226_v43, %v232_v53  ;;  %v237_v60 = vsel %vm162_vm13, %v236_v52, 1.0 }
  0xc5   : > { %507 = vrot.lane.b32.xlu1 %v501_v46, %s634_s24 }
 0x133   : > { %v503_v56 = vpop.permute.xlu1 %502 }
 0x134   : > { %v505_v57 = vunpack.i.h.bf16 %v503_v56  ;;  %v504_v58 = vunpack.i.l.bf16 %v503_v56 }
 0x136   : > { %v244_v59 = vsel %vm167_vm14, %v505_v57, 1.0  ;;  %v243_v61 = vsel %vm167_vm14, %v504_v58, 1.0 }
 0x137   : > { %v253_v62 = vmin.f32 %v237_v60, %v243_v61  ;;  %v254_v63 = vmin.f32 %v235_v51, %v244_v59  ;;  %v508_v0 = vpop.permute.xlu1 %507 }
 0x138   : > { %v510_v1 = vunpack.i.h.bf16 %v508_v0  ;;  %v509_v2 = vunpack.i.l.bf16 %v508_v0 }
 0x139   : > { %v255_v3 = vmin.f32 %v251_v54, %v253_v62  ;;  %v256_v5 = vmin.f32 %v252_v55, %v254_v63 }
 0x13a   : > { %v250_v6 = vsel %vm166_vm15, %v510_v1, 1.0  ;;  %v249_v7 = vsel %vm166_vm15, %v509_v2, 1.0 }
 0x13b   : > { %v257_v9 = vmin.f32 %v255_v3, %v249_v7  ;;  %v258_v10 = vmin.f32 %v256_v5, %v250_v6 }
 0x13d   : > { %v259_v11 = vsel %vm170_vm0, %v257_v9, 1.0  ;;  %v260_v12 = vsel %vm170_vm0, %v258_v10, 1.0 }
 0x13e   : > { %v261_v13 = vrot.slane %v259_v11, 1  ;;  %v262_v14 = vrot.slane %v260_v12, 1  ;;  %v516_v15 = vpack.i.bf16 %v260_v12, %v259_v11  ;;  %v268_v16 = vrot.slane %v260_v12, 7 }
 0x13f   : > { %v267_v17 = vrot.slane %v259_v11, 7 }
 0x140   : > { %517 = vrot.lane.b32.xlu1 %v516_v15, %s634_s24  ;;  %512 = vrot.lane.b32.xlu0 %v516_v15, %s633_s16  ;;  %v263_v18 = vsel %vm181_vm11, %v261_v13, %v262_v14  ;;  %v264_v19 = vsel %vm181_vm11, %v262_v14, %v261_v13 }
 0x141   : > { %v266_v20 = vsel %vm165_vm12, %v264_v19, 1.0  ;;  %v269_v21 = vsel %vm192_vm10, %v267_v17, %v268_v16  ;;  %v270_v22 = vsel %vm192_vm10, %v268_v16, %v267_v17  ;;  %v285_v23 = vmin.f32 %v259_v11, %v263_v18 }
 0x142   : > { %v286_v25 = vmin.f32 %v260_v12, %v266_v20  ;;  %v271_v30 = vsel %vm162_vm13, %v270_v22, 1.0 }
 0x1b2   : > { %v518_v26 = vpop.permute.xlu1 %517  ;;  %v513_v27 = vpop.permute.xlu0 %512 }
 0x1b3   : > { %v515_v28 = vunpack.i.h.bf16 %v513_v27  ;;  %v514_v29 = vunpack.i.l.bf16 %v513_v27  ;;  %v520_v31 = vunpack.i.h.bf16 %v518_v26  ;;  %v519_v32 = vunpack.i.l.bf16 %v518_v26 }
 0x1b5   : > { %v278_v33 = vsel %vm167_vm14, %v515_v28, 1.0  ;;  %v277_v34 = vsel %vm167_vm14, %v514_v29, 1.0  ;;  %v284_v39 = vsel %vm166_vm15, %v520_v31, 1.0  ;;  %v283_v40 = vsel %vm166_vm15, %v519_v32, 1.0 }
 0x1b6   : > { %v287_v35 = vmin.f32 %v271_v30, %v277_v34  ;;  %v288_v36 = vmin.f32 %v269_v21, %v278_v33 }
 0x1b8   : > { %v289_v37 = vmin.f32 %v285_v23, %v287_v35  ;;  %v290_v38 = vmin.f32 %v286_v25, %v288_v36 }
 0x1ba   : > { %v291_v41 = vmin.f32 %v289_v37, %v283_v40  ;;  %v292_v42 = vmin.f32 %v290_v38, %v284_v39 }
 0x1bc   : > { %v293_v43 = vsel %vm170_vm0, %v291_v41, 0.0  ;;  %v294_v44 = vsel %vm170_vm0, %v292_v42, 0.0 }
 0x1bd   : > { %v526_v45 = vpack.i.bf16 %v294_v44, %v293_v43  ;;  %v296_v46 = vrot.slane %v294_v44, 1  ;;  %v302_v47 = vrot.slane %v294_v44, 7  ;;  %v295_v48 = vrot.slane %v293_v43, 1 }
 0x1be   : > { %v301_v49 = vrot.slane %v293_v43, 7 }
 0x1bf   : > { %527 = vrot.lane.b32.xlu1 %v526_v45, %s634_s24  ;;  %522 = vrot.lane.b32.xlu0 %v526_v45, %s633_s16  ;;  %v297_v50 = vsel %vm181_vm11, %v295_v48, %v296_v46  ;;  %v298_v51 = vsel %vm181_vm11, %v296_v46, %v295_v48 }
 0x1c0   : > { %v303_v52 = vsel %vm192_vm10, %v301_v49, %v302_v47  ;;  %v304_v53 = vsel %vm192_vm10, %v302_v47, %v301_v49  ;;  %v300_v54 = vsel %vm165_vm12, %v298_v51, 0.0  ;;  %v319_v55 = vmax.f32 %v293_v43, %v297_v50 }
 0x1c1   : > { %v320_v56 = vmax.f32 %v294_v44, %v300_v54  ;;  %v305_v61 = vsel %vm162_vm13, %v304_v53, 0.0 }
 0x231   : > { %v528_v57 = vpop.permute.xlu1 %527  ;;  %v523_v58 = vpop.permute.xlu0 %522 }
 0x232   : > { %v525_v59 = vunpack.i.h.bf16 %v523_v58  ;;  %v524_v60 = vunpack.i.l.bf16 %v523_v58  ;;  %v530_v62 = vunpack.i.h.bf16 %v528_v57  ;;  %v529_v63 = vunpack.i.l.bf16 %v528_v57 }
 0x234   : > { %v312_v0 = vsel %vm167_vm14, %v525_v59, 0.0  ;;  %v311_v8 = vsel %vm167_vm14, %v524_v60, 0.0  ;;  %v318_v4 = vsel %vm166_vm15, %v530_v62, 0.0  ;;  %v317_v6 = vsel %vm166_vm15, %v529_v63, 0.0 }
 0x235   : > { %v321_v1 = vmax.f32 %v305_v61, %v311_v8  ;;  %v322_v2 = vmax.f32 %v303_v52, %v312_v0 }
 0x237   : > { %v323_v3 = vmax.f32 %v319_v55, %v321_v1  ;;  %v324_v5 = vmax.f32 %v320_v56, %v322_v2 }
 0x239   : > { %v325_v7 = vmax.f32 %v323_v3, %v317_v6  ;;  %v326_v9 = vmax.f32 %v324_v5, %v318_v4 }
 0x23b   : > { %328 = vst.msk [vmem:[%s134_s28] sm:$0xff] %vm327_vm1, %v325_v7  ;;  %329 = vst.msk [vmem:[%s134_s28 + $0x8] sm:$0xff] %vm327_vm1, %v326_v9 }
 0x23c   : > { %574 = shalt.err (!%p571_p2)
}
 0x23d   : > { %s575_s19 = scalar_lea.hbm %s873_s4, 256  ;;  %s579_s23 = scalar_lea.hbm %s920_s1, 512 }
 0x23e   : > { %p576_p4 = scmp.ne.s32.totalorder %s873_s4, %s575_s19  ;;  %p580_p9 = scmp.lt.u32.totalorder %s873_s4, %s920_s1 }
 0x23f   : > { %p581_p1 = scmp.lt.u32.totalorder %s579_s23, %s575_s19  ;;  %p583_p6 = scmp.lt.u32.totalorder %s575_s19, %s873_s4 }
 0x240   : > { %p577_p5 = pnand %p576_p4, %p926_p11 }
 0x241   : > { %p582_p3 = por %p581_p1, %p580_p9 }
 0x242   : > { %p578_p7 = pneg %p577_p5 }
 0x243   : > { %p584_p12 = por %p583_p6, %p582_p3 }
 0x245   : > { %p585_p13 = pnand %p584_p12, %p578_p7 }
 0x247   : > { %588 = shalt.err (!%p585_p13)
}
 0x248   : > { %s636_s16 = smov 128   ;;  %s637_s24 = smov 8  }
 0x249   : > { %440 = dma.vmem_to_hbm [thread:$0]  (%p926_p11), %s875_s30, 256, %s873_s4, %s331_s10, %s636_s16, %s636_s16, %s637_s24  }
 0x24a PF: > { %s359_s25 = sand.u32 1, %s615_s6   ;;  %p927_p8 = scmp.ne.s32.totalorder %s924_s18, 0 }
 0x24b   : > { %p928_p10 = scmp.ge.s32.totalorder %s627_s9, 2  ;;  %s360_s27 = scalar_lea.sflag [#allocation4], %s359_s25 }
 0x24d   : > { %p447_p0 = pnand %p928_p10, %p927_p8 }
 0x24f   : > { %610 = dma.done.wait (!%p447_p0), %s360_s27, 256  }
 0x250   : > { %612 = vsyncadd (!%p447_p0), %s360_s27, 4294967040  ;;  %p14_p2 = scmp.ge.s32.totalorder %s673_s12, 4   ;;  %s929_s6 = smov %s619_s7 }
 0x251   : > { %s930_s7 = smov %s623_s8  ;;  %s931_s8 = smov %s685_s15 }
 0x252   : > { %s932_s9 = smov %s673_s12  ;;  %16 = sbr.rel (!%p14_p2) target bundleno = 5 (0x5), region = 71 }
 0x259   :  { %365 = vsyncpa [#allocation3], 1 }
 0x25a   :  { %367 = vsyncpa [#allocation3 + $0x1], 1 }
 0x25b   :  { %368 = vsyncpa [#allocation4], 1 }
 0x25c   :  { %370 = vsyncpa [#allocation4 + $0x1], 1 }

</bundles_post_ra>
